<compile_context>
chip_gen: v6e
topology: v6e:2x2x1
jax: 0.10.0
libtpu: 0.0.40
codegen_flags: <defaults>
</compile_context>

<pallas_src>
import functools

import jax
import jax.numpy as jnp
from jax.experimental import pallas as pl
from jax.experimental.pallas import tpu as pltpu


def qnet_rnn_seq_kernel(x_ref, h0_ref,
                        w1_ref, b1_ref,
                        wir_ref, whr_ref, br_ref,
                        wiz_ref, whz_ref, bz_ref,
                        win_ref, bin_ref, whn_ref, bhn_ref,
                        w2_ref, b2_ref,
                        q_ref, h_ref):
    t = pl.program_id(1)

    # Start of this batch tile's rollout: load the initial hidden state into the
    # resident carry/output block.
    @pl.when(t == 0)
    def _():
        h_ref[...] = h0_ref[...]

    x = x_ref[...]          # (TB, IN)
    h = h_ref[...]          # (TB, H) -- carried across the t axis in VMEM

    # fc1 + ReLU
    x1 = jnp.dot(x, w1_ref[...], preferred_element_type=jnp.float32) + b1_ref[...]
    x1 = jnp.maximum(x1, 0.0)

    # GRUCell (PyTorch semantics), one (B, H)-wide matmul per gate term — no lane
    # slicing of a (B, 3H) result.
    #   r  = sigmoid(W_ir x + b_ir + W_hr h + b_hr)     (input/hidden biases folded)
    #   z  = sigmoid(W_iz x + b_iz + W_hz h + b_hz)
    #   n  = tanh  (W_in x + b_in + r * (W_hn h + b_hn))   <- b_hn must stay inside r*()
    #   h' = (1 - z) * n + z * h
    r = jax.nn.sigmoid(
        jnp.dot(x1, wir_ref[...], preferred_element_type=jnp.float32)
        + jnp.dot(h, whr_ref[...], preferred_element_type=jnp.float32)
        + br_ref[...])
    z = jax.nn.sigmoid(
        jnp.dot(x1, wiz_ref[...], preferred_element_type=jnp.float32)
        + jnp.dot(h, whz_ref[...], preferred_element_type=jnp.float32)
        + bz_ref[...])
    n = jnp.tanh(
        jnp.dot(x1, win_ref[...], preferred_element_type=jnp.float32) + bin_ref[...]
        + r * (jnp.dot(h, whn_ref[...], preferred_element_type=jnp.float32)
               + bhn_ref[...]))
    h_new = (1.0 - z) * n + z * h
    h_ref[...] = h_new

    # fc2 into a lane-dense (action dim padded to 128) output block.
    q_ref[...] = (jnp.dot(h_new, w2_ref[...], preferred_element_type=jnp.float32)
                  + b2_ref[...])


def prepare_qnet_params(torch_params, lane=128):
    """One-time conversion of PyTorch-layout weights to kernel layout.

    Done once at parameter load (NOT per forward call): transposes to (in, out),
    splits the GRU (3H, H) matrices into per-gate (H, H) matrices, folds the r/z
    input+hidden biases, and zero-pads fc2 to a lane-dense width.
    """
    H = torch_params["fc1_w"].shape[0]
    A = torch_params["fc2_w"].shape[0]
    a_pad = ((A + lane - 1) // lane) * lane

    w_ih = torch_params["gru_w_ih"]          # (3H, H): rows [W_ir; W_iz; W_in]
    w_hh = torch_params["gru_w_hh"]          # (3H, H): rows [W_hr; W_hz; W_hn]
    b_ih = torch_params["gru_b_ih"]          # (3H,)
    b_hh = torch_params["gru_b_hh"]          # (3H,)

    w2 = torch_params["fc2_w"].T             # (H, A)
    w2p = jnp.zeros((H, a_pad), jnp.float32).at[:, :A].set(w2)
    b2p = jnp.zeros((1, a_pad), jnp.float32).at[:, :A].set(
        torch_params["fc2_b"][None, :])

    return dict(
        w1=torch_params["fc1_w"].T,                         # (IN, H)
        b1=torch_params["fc1_b"].reshape(1, H),
        w_ir=w_ih[0:H].T, w_iz=w_ih[H:2 * H].T, w_in=w_ih[2 * H:3 * H].T,
        w_hr=w_hh[0:H].T, w_hz=w_hh[H:2 * H].T, w_hn=w_hh[2 * H:3 * H].T,
        b_r=(b_ih[0:H] + b_hh[0:H]).reshape(1, H),
        b_z=(b_ih[H:2 * H] + b_hh[H:2 * H]).reshape(1, H),
        b_in=b_ih[2 * H:3 * H].reshape(1, H),
        b_hn=b_hh[2 * H:3 * H].reshape(1, H),
        w2=w2p, b2=b2p,
    )


@functools.partial(jax.jit, static_argnames=("batch_tile", "action_dim"))
def q_network_rnn_rollout(x_seq, h0, kp, *, batch_tile, action_dim):
    """Run the full RNN rollout.

    x_seq: (T, B, input_dim) f32, h0: (B, H) f32, kp: prepare_qnet_params output.
    Returns (q_seq (T, B, action_dim), h_final (B, H)) — equivalent to calling the
    PyTorch module T times in sequence with its internal hidden state.
    """
    T, B, in_dim = x_seq.shape
    H = h0.shape[1]
    a_pad = kp["w2"].shape[1]
    assert B % batch_tile == 0 and batch_tile % 8 == 0
    nbt = B // batch_tile

    const = lambda bt, t: (0, 0)   # weights: resident in VMEM for the whole grid

    q_pad, h_final = pl.pallas_call(
        qnet_rnn_seq_kernel,
        out_shape=(jax.ShapeDtypeStruct((T, B, a_pad), jnp.float32),
                   jax.ShapeDtypeStruct((B, H), jnp.float32)),
        grid=(nbt, T),
        in_specs=[
            pl.BlockSpec((None, batch_tile, in_dim), lambda bt, t: (t, bt, 0)),  # x
            pl.BlockSpec((batch_tile, H), lambda bt, t: (bt, 0)),                # h0
            pl.BlockSpec((in_dim, H), const),   # w1
            pl.BlockSpec((1, H), const),        # b1
            pl.BlockSpec((H, H), const),        # w_ir
            pl.BlockSpec((H, H), const),        # w_hr
            pl.BlockSpec((1, H), const),        # b_r
            pl.BlockSpec((H, H), const),        # w_iz
            pl.BlockSpec((H, H), const),        # w_hz
            pl.BlockSpec((1, H), const),        # b_z
            pl.BlockSpec((H, H), const),        # w_in
            pl.BlockSpec((1, H), const),        # b_in
            pl.BlockSpec((H, H), const),        # w_hn
            pl.BlockSpec((1, H), const),        # b_hn
            pl.BlockSpec((H, a_pad), const),    # w2 (zero-padded to lane-dense)
            pl.BlockSpec((1, a_pad), const),    # b2
        ],
        out_specs=(
            pl.BlockSpec((None, batch_tile, a_pad), lambda bt, t: (t, bt, 0)),   # Q
            pl.BlockSpec((batch_tile, H), lambda bt, t: (bt, 0)),                # h carry
        ),
        compiler_params=pltpu.CompilerParams(
            dimension_semantics=("parallel", "arbitrary")),
    )(x_seq, h0,
      kp["w1"], kp["b1"],
      kp["w_ir"], kp["w_hr"], kp["b_r"],
      kp["w_iz"], kp["w_hz"], kp["b_z"],
      kp["w_in"], kp["b_in"], kp["w_hn"], kp["b_hn"],
      kp["w2"], kp["b2"])

    return q_pad[:, :, :action_dim], h_final


def _reference_rollout(x_seq, h0, params):
    """Pure-JAX reference matching PyTorch fc1->ReLU->GRUCell->fc2 semantics."""
    H = h0.shape[1]

    def step(h, x):
        a = jax.nn.relu(x @ params["fc1_w"].T + params["fc1_b"])
        gi = a @ params["gru_w_ih"].T + params["gru_b_ih"]
        gh = h @ params["gru_w_hh"].T + params["gru_b_hh"]
        i_r, i_z, i_n = gi[:, :H], gi[:, H:2 * H], gi[:, 2 * H:]
        h_r, h_z, h_n = gh[:, :H], gh[:, H:2 * H], gh[:, 2 * H:]
        r = jax.nn.sigmoid(i_r + h_r)
        z = jax.nn.sigmoid(i_z + h_z)
        n = jnp.tanh(i_n + r * h_n)
        h_new = (1.0 - z) * n + z * h
        q = h_new @ params["fc2_w"].T + params["fc2_b"]
        return h_new, q

    h_final, q_seq = jax.lax.scan(step, h0, x_seq)
    return q_seq, h_final


if __name__ == "__main__":
    # Small shapes consistent with the module: rnn_hidden_dim=32, action_dim=8,
    # input_dim=16; batch = 8 agents x 8 envs folded together; T=8 rollout steps.
    T, B, INPUT_DIM, HIDDEN, ACTION = 8, 64, 16, 32, 8
    BATCH_TILE = 32  # 2 batch tiles -> "parallel" axis exercises both v7x TCs

    key = jax.random.PRNGKey(0)
    ks = jax.random.split(key, 10)
    s = 0.1  # small deterministic init scale

    params = {
        "fc1_w":    s * jax.random.normal(ks[0], (HIDDEN, INPUT_DIM), jnp.float32),
        "fc1_b":    s * jax.random.normal(ks[1], (HIDDEN,), jnp.float32),
        "gru_w_ih": s * jax.random.normal(ks[2], (3 * HIDDEN, HIDDEN), jnp.float32),
        "gru_b_ih": s * jax.random.normal(ks[3], (3 * HIDDEN,), jnp.float32),
        "gru_w_hh": s * jax.random.normal(ks[4], (3 * HIDDEN, HIDDEN), jnp.float32),
        "gru_b_hh": s * jax.random.normal(ks[5], (3 * HIDDEN,), jnp.float32),
        "fc2_w":    s * jax.random.normal(ks[6], (ACTION, HIDDEN), jnp.float32),
        "fc2_b":    s * jax.random.normal(ks[7], (ACTION,), jnp.float32),
    }
    x_seq = jax.random.normal(ks[8], (T, B, INPUT_DIM), jnp.float32)
    h0 = jax.random.normal(ks[9], (B, HIDDEN), jnp.float32)

    # One-time weight prep (transposes / gate split / bias fold / lane padding).
    kp = prepare_qnet_params(params)

    q_seq, h_final = q_network_rnn_rollout(
        x_seq, h0, kp, batch_tile=BATCH_TILE, action_dim=ACTION)
    jax.block_until_ready((q_seq, h_final))

    q_ref, h_ref = _reference_rollout(x_seq, h0, params)
    assert jnp.allclose(q_seq, q_ref, atol=1e-4, rtol=1e-4)
    assert jnp.allclose(h_final, h_ref, atol=1e-4, rtol=1e-4)

    print("KERNEL_OK")
</pallas_src>

<mosaic_0001>
module attributes {stable_mosaic.version = 11 : i64} {
  func.func @qnet_rnn_seq_kernel(%arg0: i32, %arg1: i32, %arg2: memref<1x32x16xf32, #tpu.memory_space<vmem>>, %arg3: memref<32x32xf32, #tpu.memory_space<vmem>>, %arg4: memref<16x32xf32, #tpu.memory_space<vmem>>, %arg5: memref<1x32xf32, #tpu.memory_space<vmem>>, %arg6: memref<32x32xf32, #tpu.memory_space<vmem>>, %arg7: memref<32x32xf32, #tpu.memory_space<vmem>>, %arg8: memref<1x32xf32, #tpu.memory_space<vmem>>, %arg9: memref<32x32xf32, #tpu.memory_space<vmem>>, %arg10: memref<32x32xf32, #tpu.memory_space<vmem>>, %arg11: memref<1x32xf32, #tpu.memory_space<vmem>>, %arg12: memref<32x32xf32, #tpu.memory_space<vmem>>, %arg13: memref<1x32xf32, #tpu.memory_space<vmem>>, %arg14: memref<32x32xf32, #tpu.memory_space<vmem>>, %arg15: memref<1x32xf32, #tpu.memory_space<vmem>>, %arg16: memref<32x128xf32, #tpu.memory_space<vmem>>, %arg17: memref<1x128xf32, #tpu.memory_space<vmem>>, %arg18: memref<1x32x128xf32, #tpu.memory_space<vmem>>, %arg19: memref<32x32xf32, #tpu.memory_space<vmem>>) attributes {dimension_semantics = [#tpu.dimension_semantics<parallel>, #tpu.dimension_semantics<arbitrary>], iteration_bounds = array<i64: 2, 8>, scalar_prefetch = 0 : i64, scratch_operands = 0 : i64, tpu.core_type = #tpu.core_type<tc>, window_params = [{transform_indices = @transform_0, window_bounds = array<i64: 1, 32, 16>}, {transform_indices = @transform_1, window_bounds = array<i64: 32, 32>}, {pipeline_mode = #tpu.pipeline_mode<synchronous>, transform_indices = @transform_2, window_bounds = array<i64: 16, 32>}, {pipeline_mode = #tpu.pipeline_mode<synchronous>, transform_indices = @transform_3, window_bounds = array<i64: 1, 32>}, {pipeline_mode = #tpu.pipeline_mode<synchronous>, transform_indices = @transform_4, window_bounds = array<i64: 32, 32>}, {pipeline_mode = #tpu.pipeline_mode<synchronous>, transform_indices = @transform_5, window_bounds = array<i64: 32, 32>}, {pipeline_mode = #tpu.pipeline_mode<synchronous>, transform_indices = @transform_6, window_bounds = array<i64: 1, 32>}, {pipeline_mode = #tpu.pipeline_mode<synchronous>, transform_indices = @transform_7, window_bounds = array<i64: 32, 32>}, {pipeline_mode = #tpu.pipeline_mode<synchronous>, transform_indices = @transform_8, window_bounds = array<i64: 32, 32>}, {pipeline_mode = #tpu.pipeline_mode<synchronous>, transform_indices = @transform_9, window_bounds = array<i64: 1, 32>}, {pipeline_mode = #tpu.pipeline_mode<synchronous>, transform_indices = @transform_10, window_bounds = array<i64: 32, 32>}, {pipeline_mode = #tpu.pipeline_mode<synchronous>, transform_indices = @transform_11, window_bounds = array<i64: 1, 32>}, {pipeline_mode = #tpu.pipeline_mode<synchronous>, transform_indices = @transform_12, window_bounds = array<i64: 32, 32>}, {pipeline_mode = #tpu.pipeline_mode<synchronous>, transform_indices = @transform_13, window_bounds = array<i64: 1, 32>}, {pipeline_mode = #tpu.pipeline_mode<synchronous>, transform_indices = @transform_14, window_bounds = array<i64: 32, 128>}, {pipeline_mode = #tpu.pipeline_mode<synchronous>, transform_indices = @transform_15, window_bounds = array<i64: 1, 128>}, {transform_indices = @transform_16, window_bounds = array<i64: 1, 32, 128>}, {transform_indices = @transform_17, window_bounds = array<i64: 32, 32>}]} {
    %c0_i32 = arith.constant 0 : i32
    %0 = arith.cmpi eq, %arg1, %c0_i32 : i32
    %1 = arith.extui %0 : i1 to i32
    %c0_i32_0 = arith.constant 0 : i32
    %2 = arith.cmpi ne, %1, %c0_i32_0 : i32
    scf.if %2 {
      %c0_49 = arith.constant 0 : index
      %c0_50 = arith.constant 0 : index
      %66 = vector.load %arg3[%c0_49, %c0_50] : memref<32x32xf32, #tpu.memory_space<vmem>>, vector<32x32xf32>
      %c0_51 = arith.constant 0 : index
      %c0_52 = arith.constant 0 : index
      %67 = vector.load %arg19[%c0_51, %c0_52] : memref<32x32xf32, #tpu.memory_space<vmem>>, vector<32x32xf32>
      tpu.vector_store %arg19[%c0_51, %c0_52], %66 {strides = array<i32>} : memref<32x32xf32, #tpu.memory_space<vmem>>, vector<32x32xf32>,
    } else {
    }
    %c0 = arith.constant 0 : index
    %c0_1 = arith.constant 0 : index
    %c0_2 = arith.constant 0 : index
    %3 = vector.load %arg2[%c0, %c0_1, %c0_2] : memref<1x32x16xf32, #tpu.memory_space<vmem>>, vector<1x32x16xf32>
    %4 = vector.shape_cast %3 : vector<1x32x16xf32> to vector<32x16xf32>
    %c0_3 = arith.constant 0 : index
    %c0_4 = arith.constant 0 : index
    %5 = vector.load %arg19[%c0_3, %c0_4] : memref<32x32xf32, #tpu.memory_space<vmem>>, vector<32x32xf32>
    %c0_5 = arith.constant 0 : index
    %c0_6 = arith.constant 0 : index
    %6 = vector.load %arg4[%c0_5, %c0_6] : memref<16x32xf32, #tpu.memory_space<vmem>>, vector<16x32xf32>
    %cst = arith.constant dense<0.000000e+00> : vector<32x32xf32>
    %7 = tpu.matmul %4, %6, %cst {dimension_numbers = #tpu.dot_dimension_numbers<[1], [0], [0], [1], [0, 0, 1, 1], [], []>} : vector<32x16xf32>, vector<16x32xf32>, vector<32x32xf32> -> vector<32x32xf32>
    %c0_7 = arith.constant 0 : index
    %c0_8 = arith.constant 0 : index
    %8 = vector.load %arg5[%c0_7, %c0_8] : memref<1x32xf32, #tpu.memory_space<vmem>>, vector<1x32xf32>
    %9 = vector.broadcast %8 : vector<1x32xf32> to vector<32x32xf32>
    %10 = arith.addf %7, %9 : vector<32x32xf32>
    %cst_9 = arith.constant 0.000000e+00 : f32
    %11 = vector.broadcast %cst_9 : f32 to vector<32x32xf32>
    %12 = arith.maximumf %10, %11 : vector<32x32xf32>
    %c0_10 = arith.constant 0 : index
    %c0_11 = arith.constant 0 : index
    %13 = vector.load %arg6[%c0_10, %c0_11] : memref<32x32xf32, #tpu.memory_space<vmem>>, vector<32x32xf32>
    %cst_12 = arith.constant dense<0.000000e+00> : vector<32x32xf32>
    %14 = tpu.matmul %12, %13, %cst_12 {dimension_numbers = #tpu.dot_dimension_numbers<[1], [0], [0], [1], [0, 0, 1, 1], [], []>} : vector<32x32xf32>, vector<32x32xf32>, vector<32x32xf32> -> vector<32x32xf32>
    %c0_13 = arith.constant 0 : index
    %c0_14 = arith.constant 0 : index
    %15 = vector.load %arg7[%c0_13, %c0_14] : memref<32x32xf32, #tpu.memory_space<vmem>>, vector<32x32xf32>
    %cst_15 = arith.constant dense<0.000000e+00> : vector<32x32xf32>
    %16 = tpu.matmul %5, %15, %cst_15 {dimension_numbers = #tpu.dot_dimension_numbers<[1], [0], [0], [1], [0, 0, 1, 1], [], []>} : vector<32x32xf32>, vector<32x32xf32>, vector<32x32xf32> -> vector<32x32xf32>
    %17 = arith.addf %14, %16 : vector<32x32xf32>
    %c0_16 = arith.constant 0 : index
    %c0_17 = arith.constant 0 : index
    %18 = vector.load %arg8[%c0_16, %c0_17] : memref<1x32xf32, #tpu.memory_space<vmem>>, vector<1x32xf32>
    %19 = vector.broadcast %18 : vector<1x32xf32> to vector<32x32xf32>
    %20 = arith.addf %17, %19 : vector<32x32xf32>
    %21 = arith.negf %20 : vector<32x32xf32>
    %22 = math.exp %21 : vector<32x32xf32>
    %cst_18 = arith.constant 1.000000e+00 : f32
    %23 = vector.broadcast %cst_18 : f32 to vector<32x32xf32>
    %24 = arith.addf %23, %22 : vector<32x32xf32>
    %25 = arith.divf %23, %24 : vector<32x32xf32>
    %c0_19 = arith.constant 0 : index
    %c0_20 = arith.constant 0 : index
    %26 = vector.load %arg9[%c0_19, %c0_20] : memref<32x32xf32, #tpu.memory_space<vmem>>, vector<32x32xf32>
    %cst_21 = arith.constant dense<0.000000e+00> : vector<32x32xf32>
    %27 = tpu.matmul %12, %26, %cst_21 {dimension_numbers = #tpu.dot_dimension_numbers<[1], [0], [0], [1], [0, 0, 1, 1], [], []>} : vector<32x32xf32>, vector<32x32xf32>, vector<32x32xf32> -> vector<32x32xf32>
    %c0_22 = arith.constant 0 : index
    %c0_23 = arith.constant 0 : index
    %28 = vector.load %arg10[%c0_22, %c0_23] : memref<32x32xf32, #tpu.memory_space<vmem>>, vector<32x32xf32>
    %cst_24 = arith.constant dense<0.000000e+00> : vector<32x32xf32>
    %29 = tpu.matmul %5, %28, %cst_24 {dimension_numbers = #tpu.dot_dimension_numbers<[1], [0], [0], [1], [0, 0, 1, 1], [], []>} : vector<32x32xf32>, vector<32x32xf32>, vector<32x32xf32> -> vector<32x32xf32>
    %30 = arith.addf %27, %29 : vector<32x32xf32>
    %c0_25 = arith.constant 0 : index
    %c0_26 = arith.constant 0 : index
    %31 = vector.load %arg11[%c0_25, %c0_26] : memref<1x32xf32, #tpu.memory_space<vmem>>, vector<1x32xf32>
    %32 = vector.broadcast %31 : vector<1x32xf32> to vector<32x32xf32>
    %33 = arith.addf %30, %32 : vector<32x32xf32>
    %34 = arith.negf %33 : vector<32x32xf32>
    %35 = math.exp %34 : vector<32x32xf32>
    %cst_27 = arith.constant 1.000000e+00 : f32
    %36 = vector.broadcast %cst_27 : f32 to vector<32x32xf32>
    %37 = arith.addf %36, %35 : vector<32x32xf32>
    %38 = arith.divf %36, %37 : vector<32x32xf32>
    %c0_28 = arith.constant 0 : index
    %c0_29 = arith.constant 0 : index
    %39 = vector.load %arg12[%c0_28, %c0_29] : memref<32x32xf32, #tpu.memory_space<vmem>>, vector<32x32xf32>
    %cst_30 = arith.constant dense<0.000000e+00> : vector<32x32xf32>
    %40 = tpu.matmul %12, %39, %cst_30 {dimension_numbers = #tpu.dot_dimension_numbers<[1], [0], [0], [1], [0, 0, 1, 1], [], []>} : vector<32x32xf32>, vector<32x32xf32>, vector<32x32xf32> -> vector<32x32xf32>
    %c0_31 = arith.constant 0 : index
    %c0_32 = arith.constant 0 : index
    %41 = vector.load %arg13[%c0_31, %c0_32] : memref<1x32xf32, #tpu.memory_space<vmem>>, vector<1x32xf32>
    %42 = vector.broadcast %41 : vector<1x32xf32> to vector<32x32xf32>
    %43 = arith.addf %40, %42 : vector<32x32xf32>
    %c0_33 = arith.constant 0 : index
    %c0_34 = arith.constant 0 : index
    %44 = vector.load %arg14[%c0_33, %c0_34] : memref<32x32xf32, #tpu.memory_space<vmem>>, vector<32x32xf32>
    %cst_35 = arith.constant dense<0.000000e+00> : vector<32x32xf32>
    %45 = tpu.matmul %5, %44, %cst_35 {dimension_numbers = #tpu.dot_dimension_numbers<[1], [0], [0], [1], [0, 0, 1, 1], [], []>} : vector<32x32xf32>, vector<32x32xf32>, vector<32x32xf32> -> vector<32x32xf32>
    %c0_36 = arith.constant 0 : index
    %c0_37 = arith.constant 0 : index
    %46 = vector.load %arg15[%c0_36, %c0_37] : memref<1x32xf32, #tpu.memory_space<vmem>>, vector<1x32xf32>
    %47 = vector.broadcast %46 : vector<1x32xf32> to vector<32x32xf32>
    %48 = arith.addf %45, %47 : vector<32x32xf32>
    %49 = arith.mulf %25, %48 : vector<32x32xf32>
    %50 = arith.addf %43, %49 : vector<32x32xf32>
    %51 = math.tanh %50 : vector<32x32xf32>
    %cst_38 = arith.constant 1.000000e+00 : f32
    %52 = vector.broadcast %cst_38 : f32 to vector<32x32xf32>
    %53 = arith.subf %52, %38 : vector<32x32xf32>
    %54 = arith.mulf %53, %51 : vector<32x32xf32>
    %55 = arith.mulf %38, %5 : vector<32x32xf32>
    %56 = arith.addf %54, %55 : vector<32x32xf32>
    %c0_39 = arith.constant 0 : index
    %c0_40 = arith.constant 0 : index
    %57 = vector.load %arg19[%c0_39, %c0_40] : memref<32x32xf32, #tpu.memory_space<vmem>>, vector<32x32xf32>
    tpu.vector_store %arg19[%c0_39, %c0_40], %56 {strides = array<i32>} : memref<32x32xf32, #tpu.memory_space<vmem>>, vector<32x32xf32>,
    %c0_41 = arith.constant 0 : index
    %c0_42 = arith.constant 0 : index
    %58 = vector.load %arg16[%c0_41, %c0_42] : memref<32x128xf32, #tpu.memory_space<vmem>>, vector<32x128xf32>
    %cst_43 = arith.constant dense<0.000000e+00> : vector<32x128xf32>
    %59 = tpu.matmul %56, %58, %cst_43 {dimension_numbers = #tpu.dot_dimension_numbers<[1], [0], [0], [1], [0, 0, 1, 1], [], []>} : vector<32x32xf32>, vector<32x128xf32>, vector<32x128xf32> -> vector<32x128xf32>
    %c0_44 = arith.constant 0 : index
    %c0_45 = arith.constant 0 : index
    %60 = vector.load %arg17[%c0_44, %c0_45] : memref<1x128xf32, #tpu.memory_space<vmem>>, vector<1x128xf32>
    %61 = vector.broadcast %60 : vector<1x128xf32> to vector<32x128xf32>
    %62 = arith.addf %59, %61 : vector<32x128xf32>
    %c0_46 = arith.constant 0 : index
    %c0_47 = arith.constant 0 : index
    %c0_48 = arith.constant 0 : index
    %63 = vector.load %arg18[%c0_46, %c0_47, %c0_48] : memref<1x32x128xf32, #tpu.memory_space<vmem>>, vector<1x32x128xf32>
    %64 = vector.shape_cast %63 : vector<1x32x128xf32> to vector<32x128xf32>
    %65 = vector.shape_cast %62 : vector<32x128xf32> to vector<1x32x128xf32>
    tpu.vector_store %arg18[%c0_46, %c0_47, %c0_48], %65 {strides = array<i32>} : memref<1x32x128xf32, #tpu.memory_space<vmem>>, vector<1x32x128xf32>,
    return
  }
  func.func @transform_0(%arg0: i32, %arg1: i32) -> (i32, i32, i32) {
    %c0_i32 = arith.constant 0 : i32
    %c0_i32_0 = arith.constant 0 : i32
    return %arg1, %arg0, %c0_i32 : i32, i32, i32
  }
  func.func @transform_1(%arg0: i32, %arg1: i32) -> (i32, i32) {
    %c0_i32 = arith.constant 0 : i32
    %c0_i32_0 = arith.constant 0 : i32
    return %arg0, %c0_i32 : i32, i32
  }
  func.func @transform_2(%arg0: i32, %arg1: i32) -> (i32, i32) {
    %c0_i32 = arith.constant 0 : i32
    %c0_i32_0 = arith.constant 0 : i32
    %c0_i32_1 = arith.constant 0 : i32
    return %c0_i32, %c0_i32_0 : i32, i32
  }
  func.func @transform_3(%arg0: i32, %arg1: i32) -> (i32, i32) {
    %c0_i32 = arith.constant 0 : i32
    %c0_i32_0 = arith.constant 0 : i32
    %c0_i32_1 = arith.constant 0 : i32
    return %c0_i32, %c0_i32_0 : i32, i32
  }
  func.func @transform_4(%arg0: i32, %arg1: i32) -> (i32, i32) {
    %c0_i32 = arith.constant 0 : i32
    %c0_i32_0 = arith.constant 0 : i32
    %c0_i32_1 = arith.constant 0 : i32
    return %c0_i32, %c0_i32_0 : i32, i32
  }
  func.func @transform_5(%arg0: i32, %arg1: i32) -> (i32, i32) {
    %c0_i32 = arith.constant 0 : i32
    %c0_i32_0 = arith.constant 0 : i32
    %c0_i32_1 = arith.constant 0 : i32
    return %c0_i32, %c0_i32_0 : i32, i32
  }
  func.func @transform_6(%arg0: i32, %arg1: i32) -> (i32, i32) {
    %c0_i32 = arith.constant 0 : i32
    %c0_i32_0 = arith.constant 0 : i32
    %c0_i32_1 = arith.constant 0 : i32
    return %c0_i32, %c0_i32_0 : i32, i32
  }
  func.func @transform_7(%arg0: i32, %arg1: i32) -> (i32, i32) {
    %c0_i32 = arith.constant 0 : i32
    %c0_i32_0 = arith.constant 0 : i32
    %c0_i32_1 = arith.constant 0 : i32
    return %c0_i32, %c0_i32_0 : i32, i32
  }
  func.func @transform_8(%arg0: i32, %arg1: i32) -> (i32, i32) {
    %c0_i32 = arith.constant 0 : i32
    %c0_i32_0 = arith.constant 0 : i32
    %c0_i32_1 = arith.constant 0 : i32
    return %c0_i32, %c0_i32_0 : i32, i32
  }
  func.func @transform_9(%arg0: i32, %arg1: i32) -> (i32, i32) {
    %c0_i32 = arith.constant 0 : i32
    %c0_i32_0 = arith.constant 0 : i32
    %c0_i32_1 = arith.constant 0 : i32
    return %c0_i32, %c0_i32_0 : i32, i32
  }
  func.func @transform_10(%arg0: i32, %arg1: i32) -> (i32, i32) {
    %c0_i32 = arith.constant 0 : i32
    %c0_i32_0 = arith.constant 0 : i32
    %c0_i32_1 = arith.constant 0 : i32
    return %c0_i32, %c0_i32_0 : i32, i32
  }
  func.func @transform_11(%arg0: i32, %arg1: i32) -> (i32, i32) {
    %c0_i32 = arith.constant 0 : i32
    %c0_i32_0 = arith.constant 0 : i32
    %c0_i32_1 = arith.constant 0 : i32
    return %c0_i32, %c0_i32_0 : i32, i32
  }
  func.func @transform_12(%arg0: i32, %arg1: i32) -> (i32, i32) {
    %c0_i32 = arith.constant 0 : i32
    %c0_i32_0 = arith.constant 0 : i32
    %c0_i32_1 = arith.constant 0 : i32
    return %c0_i32, %c0_i32_0 : i32, i32
  }
  func.func @transform_13(%arg0: i32, %arg1: i32) -> (i32, i32) {
    %c0_i32 = arith.constant 0 : i32
    %c0_i32_0 = arith.constant 0 : i32
    %c0_i32_1 = arith.constant 0 : i32
    return %c0_i32, %c0_i32_0 : i32, i32
  }
  func.func @transform_14(%arg0: i32, %arg1: i32) -> (i32, i32) {
    %c0_i32 = arith.constant 0 : i32
    %c0_i32_0 = arith.constant 0 : i32
    %c0_i32_1 = arith.constant 0 : i32
    return %c0_i32, %c0_i32_0 : i32, i32
  }
  func.func @transform_15(%arg0: i32, %arg1: i32) -> (i32, i32) {
    %c0_i32 = arith.constant 0 : i32
    %c0_i32_0 = arith.constant 0 : i32
    %c0_i32_1 = arith.constant 0 : i32
    return %c0_i32, %c0_i32_0 : i32, i32
  }
  func.func @transform_16(%arg0: i32, %arg1: i32) -> (i32, i32, i32) {
    %c0_i32 = arith.constant 0 : i32
    %c0_i32_0 = arith.constant 0 : i32
    return %arg1, %arg0, %c0_i32 : i32, i32, i32
  }
  func.func @transform_17(%arg0: i32, %arg1: i32) -> (i32, i32) {
    %c0_i32 = arith.constant 0 : i32
    %c0_i32_0 = arith.constant 0 : i32
    return %arg0, %c0_i32 : i32, i32
  }
}

</mosaic_0001>

<bundles_post_ra>
// kernel: q_network_rnn_rollout.1
= control target key start
LH: loop header
LB: loop body
LE: loop exit
PB: predicated region body
PF: predicated region fallthrough
CT: control target
= control target key end

     0   :  { %s2123_s24 = smov 0   ;;  %s2125_s25 = smov 0   ;;  %s2379_s0 = inlined_call_operand.vmem [shape: f32[8,64,16], index: 0, kind: input, shape index: {}]   ;;  %s2380_s1 = inlined_call_operand.vmem [shape: f32[64,32], index: 1, kind: input, shape index: {}]   ;;  %s2381_s2 = inlined_call_operand.vmem [shape: f32[16,32], index: 2, kind: input, shape index: {}]   ;;  %s2382_s3 = inlined_call_operand.vmem [shape: f32[1,32], index: 3, kind: input, shape index: {}]   ;;  %s2383_s4 = inlined_call_operand.vmem [shape: f32[32,32], index: 4, kind: input, shape index: {}]   ;;  %s2384_s5 = inlined_call_operand.vmem [shape: f32[32,32], index: 5, kind: input, shape index: {}]   ;;  %s2385_s6 = inlined_call_operand.vmem [shape: f32[1,32], index: 6, kind: input, shape index: {}]   ;;  %s2386_s7 = inlined_call_operand.vmem [shape: f32[32,32], index: 7, kind: input, shape index: {}]   ;;  %s2387_s8 = inlined_call_operand.vmem [shape: f32[32,32], index: 8, kind: input, shape index: {}]   ;;  %s2388_s9 = inlined_call_operand.vmem [shape: f32[1,32], index: 9, kind: input, shape index: {}]   ;;  %s2389_s10 = inlined_call_operand.vmem [shape: f32[32,32], index: 10, kind: input, shape index: {}]   ;;  %s2390_s11 = inlined_call_operand.vmem [shape: f32[1,32], index: 11, kind: input, shape index: {}]   ;;  %s2391_s12 = inlined_call_operand.vmem [shape: f32[32,32], index: 12, kind: input, shape index: {}]   ;;  %s2392_s13 = inlined_call_operand.vmem [shape: f32[1,32], index: 13, kind: input, shape index: {}]   ;;  %s2393_s14 = inlined_call_operand.vmem [shape: f32[32,128], index: 14, kind: input, shape index: {}]   ;;  %s2394_s15 = inlined_call_operand.vmem [shape: f32[1,128], index: 15, kind: input, shape index: {}]   ;;  %s2395_s16 = inlined_call_operand.vmem [shape: f32[8,64,128], index: 16, kind: output, shape index: {0}]   ;;  %s2396_s17 = inlined_call_operand.vmem [shape: f32[64,32], index: 17, kind: output, shape index: {1}]  }
   0x1   :  { %2400 = sst [smem:[#allocation7_spill]] %s2379_s0  ;;  %s2127_s26 = smov 0  }
   0x2   :  { %2401 = sst [smem:[#allocation8_spill]] %s2380_s1  ;;  %s2129_s27 = smov 0  }
   0x3   :  { %2402 = sst [smem:[#allocation9_spill]] %s2385_s6  ;;  %s2131_s28 = smov 0  }
   0x4   :  { %2403 = sst [smem:[#allocation10_spill]] %s2388_s9 }
   0x5   :  { %2404 = sst [smem:[#allocation11_spill]] %s2390_s11 }
   0x6   :  { %2405 = sst [smem:[#allocation12_spill]] %s2392_s13 }
   0x7   :  { %2406 = sst [smem:[#allocation13_spill]] %s2394_s15 }
   0x8 LB: > { %2407 = sst [smem:[#allocation2_spill]] %s2023_s26  ;;  %s37_s29 = sadd.s32 1, %s2023_s26  ;;  %s2031_s28 = sphi %s2131_s28, %s28_s28   ;;  %s2027_s27 = sphi %s2129_s27, %s2423_s27   ;;  %s2023_s26 = sphi %s2127_s26, %s2422_s26   ;;  %s2019_s25 = sphi %s2125_s25, %s2421_s25   ;;  %s2015_s24 = sphi %s2123_s24, %s2420_s24  }
   0x9   : > { %2408 = sst [smem:[#allocation3_spill]] %s2027_s27  ;;  %s40_s0 = sadd.s32 1, %s2027_s27 }
   0xa   : > { %2409 = sst [smem:[#allocation4_spill]] %s2031_s28  ;;  %p38_p0 = scmp.ge.s32.totalorder %s37_s29, 8 }
   0xb   : > { %p1683_p1 = scmp.ge.s32.totalorder %s2031_s28, 1  ;;  %p522_p2 = scmp.lt.s32.totalorder %s2031_s28, 17 }
   0xc   : > { %s2425_s29 = smov (%p38_p0, %s37_s29), 0  ;;  %s2427_s0 = smov (!%p38_p0, %s40_s0), %s2027_s27 }
   0xd   : > { %2410 = sst [smem:[#allocation5_spill]] %s2425_s29  ;;  %p523_p3 = pnand %p1683_p1, %p522_p2 }
   0xe   : > { %p42_p4 = scmp.ge.s32.totalorder %s2427_s0, 2  ;;  %s1684_s30 = sshll.u32 (!%p523_p3), %s2019_s25, 2 }
   0xf   : > { %526 = sbr.rel (%p523_p3) target bundleno = 690 (0x2b2), region = 84  ;;  %p593_p5 = scmp.lt.s32.totalorder (!%p523_p3), %s2015_s24, 7 }
  0x10   : > { %s2429_s0 = smov (%p42_p4, %s2427_s0), 0  ;;  %p595_p6 = scmp.lt.s32.totalorder (!%p523_p3), %s1684_s30, 7 }
  0x11   : > { %2411 = sst [smem:[#allocation6_spill]] %s2429_s0  ;;  %p1694_p7 = scmp.ne.s32.totalorder (!%p523_p3), %s2015_s24, 0 }
  0x12   : > { %s2412_s29 = sld [smem:[#allocation8_spill]] (!%p523_p3) }
  0x13   : > { %s2413_s15 = sld [smem:[#allocation7_spill]] (!%p523_p3) }
  0x14   : > { %s594_s18 = scalar_select %p593_p5, %s2015_s24, 7 }
  0x15   : > { %s2431_s30 = smov (!%p595_p6, %s1684_s30), 7  ;;  %627 = sbr.rel (%p1694_p7) target bundleno = 29 (0x1d), region = 88 }
  0x16   : > { %s1685_s19 = sshll.u32 %s594_s18, 3  ;;  %s1688_s20 = sshll.u32 %s2431_s30, 3 }
  0x17   : > { %s598_s1 = sadd.s32 %s1685_s19, %s2431_s30  ;;  %s2173_s18 = scalar_lea.vmem %s2396_s17, %s1688_s20 }
  0x18   : > { %s1686_s21 = sshll.u32 %s598_s1, 3  ;;  %s606_s27 = scalar_lea.vmem %s2412_s29, %s1688_s20 }
  0x19   : > { %s2163_s0 = scalar_lea.vmem %s2413_s15, %s1686_s21  ;;  %s2168_s13 = scalar_lea.vmem %s2395_s16, %s1686_s21 }
  0x1a   : > { %v628_v0 = vld [vmem:[%s606_s27] sm:$0xff]  ;;  %vm632_vm0 = vcmask 261120   ;;  %v629_v1 = vld [vmem:[%s606_s27 + $0x8] sm:$0xff]  ;;  %v630_v2 = vld [vmem:[%s606_s27 + $0x10] sm:$0xff] }
  0x1b   : > { %633 = vst.msk [vmem:[%s2173_s18] sm:$0xff] %vm632_vm0, %v628_v0  ;;  %v631_v3 = vld [vmem:[%s606_s27 + $0x18] sm:$0xff]  ;;  %634 = vst.msk [vmem:[%s2173_s18 + $0x8] sm:$0xff] %vm632_vm0, %v629_v1 }
  0x1c   : > { %635 = vst.msk [vmem:[%s2173_s18 + $0x10] sm:$0xff] %vm632_vm0, %v630_v2  ;;  %636 = vst.msk [vmem:[%s2173_s18 + $0x18] sm:$0xff] %vm632_vm0, %v631_v3 }
  0x1d PF: > { %v646_v4 = vld [vmem:[%s2381_s2 + $0x8] sm:$0xff]  ;;  %v645_v5 = vld [vmem:[%s2381_s2] sm:$0xff]  ;;  %vm654_vm1 = vcmask 130048   ;;  %v763_v8 = vld [vmem:[%s2384_s5 + $0x18] sm:$0xff]  ;;  %vm764_vm2 = vcmask 261120   ;;  %s2414_s19 = sld [smem:[#allocation9_spill]] }
  0x1e   : > { %v637_v6 = vld [vmem:[%s2163_s0] sm:$0xff]  ;;  %1805 = vmatprep.subr.mxu0 %v646_v4  ;;  %v638_v7 = vld [vmem:[%s2163_s0 + $0x8] sm:$0xff]  ;;  %v762_v9 = vld [vmem:[%s2384_s5 + $0x10] sm:$0xff]  ;;  %1815 = vmatprep.subr.mxu1 %v763_v8  ;;  %s2415_s21 = sld [smem:[#allocation10_spill]] }
  0x1f   : > { %1809 = vmatprep.mubr.msk.f32.mxu0 %vm654_vm1, %v637_v6  ;;  %1806 = vmatpush3.msra.mxu0 %v646_v4  ;;  %v639_v10 = vld [vmem:[%s2163_s0 + $0x10] sm:$0xff]  ;;  %v761_v11 = vld [vmem:[%s2384_s5 + $0x8] sm:$0xff]  ;;  %v640_v13 = vld [vmem:[%s2163_s0 + $0x18] sm:$0xff]  ;;  %s2416_s0 = sld [smem:[#allocation12_spill]] }
  0x20   : > { %1807 = vmatprep.subr.mxu0 %v645_v5  ;;  %1816 = vmatpush3.msra.mxu1 %v763_v8  ;;  %v760_v14 = vld [vmem:[%s2384_s5] sm:$0xff]  ;;  %v759_v15 = vld [vmem:[%s2383_s4 + $0x18] sm:$0xff]  ;;  %v1000_v19 = vld [vmem:[%s2387_s8 + $0x10] sm:$0xff]  ;;  %s2417_s9 = sld [smem:[#allocation11_spill]] }
  0x21   : > { %1808 = vmatpush3.msra.mxu0 %v645_v5  ;;  %1817 = vmatprep.subr.mxu1 %v762_v9  ;;  %v1001_v17 = vld [vmem:[%s2387_s8 + $0x18] sm:$0xff]  ;;  %v999_v21 = vld [vmem:[%s2387_s8 + $0x8] sm:$0xff]  ;;  %v998_v22 = vld [vmem:[%s2387_s8] sm:$0xff]  ;;  %s2418_s24 = sld [smem:[#allocation13_spill]] }
  0x22   : > { %v2200_v12 = vld [vmem:[%s2173_s18] sm:$0xff]  ;;  %1810 = vmatmul.mubr.msk.f32.vlgmr.msra.gmra.mxu0 %vm654_vm1, %v638_v7  ;;  %1818 = vmatpush3.msra.mxu1 %v762_v9  ;;  %v2214_v16 = vld [vmem:[%s2173_s18 + $0x8] sm:$0xff]  ;;  %v1210_v23 = vld [vmem:[%s2389_s10 + $0x18] sm:$0xff] }
  0x23   : > { %1812 = vmatprep.mubr.msk.f32.mxu0 %vm654_vm1, %v639_v10  ;;  %1819 = vmatprep.subr.mxu1 %v761_v11  ;;  %v2221_v18 = vld [vmem:[%s2173_s18 + $0x10] sm:$0xff]  ;;  %v2231_v20 = vld [vmem:[%s2173_s18 + $0x18] sm:$0xff]  ;;  %v757_v26 = vld [vmem:[%s2383_s4 + $0x8] sm:$0xff] }
  0x24   : > { %1823 = vmatprep.mubr.msk.f32.mxu1 %vm764_vm2, %v2200_v12  ;;  %1820 = vmatpush3.msra.mxu1 %v761_v11  ;;  %v758_v24 = vld [vmem:[%s2383_s4 + $0x10] sm:$0xff]  ;;  %v1208_v27 = vld [vmem:[%s2389_s10 + $0x8] sm:$0xff]  ;;  %v756_v28 = vld [vmem:[%s2383_s4] sm:$0xff] }
  0x25   : > { %1829 = vmatprep.subr.mxu0 %v759_v15  ;;  %1821 = vmatprep.subr.mxu1 %v760_v14  ;;  %v1209_v25 = vld [vmem:[%s2389_s10 + $0x10] sm:$0xff]  ;;  %v1207_v29 = vld [vmem:[%s2389_s10] sm:$0xff]  ;;  %v997_v30 = vld [vmem:[%s2386_s7 + $0x18] sm:$0xff] }
  0x26   : > { %1813 = vmatmul.mubr.msk.f32.gmra.mxu0 %vm654_vm1, %v640_v13  ;;  %1822 = vmatpush3.msra.mxu1 %v760_v14  ;;  %v1695_v31 = vld [vmem:[%s2382_s3] ss:$0 sm:$0xff]  ;;  %v996_v42 = vld [vmem:[%s2386_s7 + $0x10] sm:$0xff]  ;;  %v995_v45 = vld [vmem:[%s2386_s7 + $0x8] sm:$0xff] }
  0x27   : > { %1830 = vmatpush3.msra.mxu0 %v759_v15  ;;  %1824 = vmatmul.mubr.msk.f32.vlgmr.msra.gmra.mxu1 %vm764_vm2, %v2214_v16  ;;  %v994_v46 = vld [vmem:[%s2386_s7] sm:$0xff]  ;;  %v1306_v47 = vld [vmem:[%s2391_s12 + $0x18] sm:$0xff]  ;;  %v1305_v48 = vld [vmem:[%s2391_s12 + $0x10] sm:$0xff] }
  0x28   : > { %1843 = vmatprep.subr.mxu1 %v1001_v17  ;;  %1826 = vmatprep.mubr.msk.f32.mxu1 %vm764_vm2, %v2221_v18  ;;  %v1304_v49 = vld [vmem:[%s2391_s12 + $0x8] sm:$0xff]  ;;  %v1303_v50 = vld [vmem:[%s2391_s12] sm:$0xff]  ;;  %v1434_v51 = vld [vmem:[%s2393_s14 + $0x18] sm:$0xff] }
  0x29   : > { %1844 = vmatpush3.msra.mxu1 %v1001_v17  ;;  %1831 = vmatprep.subr.mxu0 %v758_v24  ;;  %v1433_v52 = vld [vmem:[%s2393_s14 + $0x10] sm:$0xff]  ;;  %v1432_v53 = vld [vmem:[%s2393_s14 + $0x8] sm:$0xff]  ;;  %v1431_v54 = vld [vmem:[%s2393_s14] sm:$0xff] }
  0x2a   : > { %1845 = vmatprep.subr.mxu1 %v1000_v19  ;;  %1832 = vmatpush3.msra.mxu0 %v758_v24  ;;  %v1708_v60 = vld [vmem:[%s2414_s19] ss:$0 sm:$0xff] }
  0x2b   : > { %1846 = vmatpush3.msra.mxu1 %v1000_v19  ;;  %1833 = vmatprep.subr.mxu0 %v757_v26  ;;  %v1721_v15 = vld [vmem:[%s2415_s21] ss:$0 sm:$0xff] }
  0x2c   : > { %1827 = vmatmul.mubr.msk.f32.gmra.mxu1 %vm764_vm2, %v2231_v20  ;;  %1847 = vmatprep.subr.mxu1 %v999_v21 }
  0x2d   : > { %1848 = vmatpush3.msra.mxu1 %v999_v21  ;;  %1851 = vmatprep.mubr.msk.f32.mxu1 %vm764_vm2, %v2200_v12 }
  0x2e   : > { %1849 = vmatprep.subr.mxu1 %v998_v22  ;;  %1834 = vmatpush3.msra.mxu0 %v757_v26 }
  0x2f   : > { %1850 = vmatpush3.msra.mxu1 %v998_v22  ;;  %1835 = vmatprep.subr.mxu0 %v756_v28 }
  0x30   : > { %1852 = vmatmul.mubr.msk.f32.vlgmr.msra.gmra.mxu1 %vm764_vm2, %v2214_v16  ;;  %1871 = vmatprep.subr.mxu1 %v1210_v23 }
  0x31   : > { %1854 = vmatprep.mubr.msk.f32.mxu1 %vm764_vm2, %v2221_v18  ;;  %1872 = vmatpush3.msra.mxu1 %v1210_v23 }
  0x32   : > { %1873 = vmatprep.subr.mxu1 %v1209_v25  ;;  %1836 = vmatpush3.msra.mxu0 %v756_v28 }
  0x33   : > { %1874 = vmatpush3.msra.mxu1 %v1209_v25  ;;  %1857 = vmatprep.subr.mxu0 %v997_v30 }
  0x34   : > { %1855 = vmatmul.mubr.msk.f32.gmra.mxu1 %vm764_vm2, %v2231_v20  ;;  %1875 = vmatprep.subr.mxu1 %v1208_v27 }
  0x35   : > { %1876 = vmatpush3.msra.mxu1 %v1208_v27 }
  0x36   : > { %1877 = vmatprep.subr.mxu1 %v1207_v29 }
  0x37   : > { %1878 = vmatpush3.msra.mxu1 %v1207_v29 }
  0x38   : > { %1899 = vmatprep.subr.mxu1 %v1434_v51 }
  0xe2   : > { %v1811_v32 = vpop.f32.mrf.mxu0 }
  0xe3   : > { %v739_v33 = vadd.f32 %v1811_v32, %v1695_v31 }
  0xe4   : > { %v733_v34 = vpop.f32.mrf.mxu0 }
  0xe5   : > { %v734_v35 = vadd.f32 %v1695_v31, %v733_v34  ;;  %v753_v38 = vmax.f32 %v739_v33, 0.0 }
  0xe6   : > { %v1814_v36 = vpop.f32.mrf.mxu0 }
  0xe7   : > { %v752_v37 = vmax.f32 %v734_v35, 0.0  ;;  %v749_v39 = vadd.f32 %v1814_v36, %v1695_v31  ;;  %v1825_v55 = vpop.f32.mrf.mxu1 }
  0xe8   : > { %v743_v40 = vpop.f32.mrf.mxu0 }
  0xe9   : > { %v744_v41 = vadd.f32 %v1695_v31, %v743_v40  ;;  %1837 = vmatprep.mubr.msk.f32.mxu0 %vm764_vm2, %v752_v37  ;;  %1879 = vmatprep.mubr.msk.f32.mxu1 %vm764_vm2, %v752_v37  ;;  %v755_v44 = vmax.f32 %v749_v39, 0.0  ;;  %v843_v56 = vpop.f32.mrf.mxu1 }
  0xea   : > { %1838 = vmatmul.mubr.msk.f32.vlgmr.msra.gmra.mxu0 %vm764_vm2, %v753_v38  ;;  %1880 = vmatmul.mubr.msk.f32.vlgmr.msra.gmra.mxu1 %vm764_vm2, %v753_v38 }
  0xeb   : > { %v754_v43 = vmax.f32 %v744_v41, 0.0  ;;  %1858 = vmatpush3.msra.mxu0 %v997_v30  ;;  %1900 = vmatpush3.msra.mxu1 %v1434_v51 }
  0xec   : > { %1859 = vmatprep.subr.mxu0 %v996_v42  ;;  %1901 = vmatprep.subr.mxu1 %v1433_v52  ;;  %v1828_v57 = vpop.f32.mrf.mxu1 }
  0xed   : > { %1840 = vmatprep.mubr.msk.f32.mxu0 %vm764_vm2, %v754_v43  ;;  %1860 = vmatpush3.msra.mxu0 %v996_v42 }
  0xee   : > { %1882 = vmatprep.mubr.msk.f32.mxu1 %vm764_vm2, %v754_v43  ;;  %1841 = vmatmul.mubr.msk.f32.gmra.mxu0 %vm764_vm2, %v755_v44  ;;  %v853_v58 = vpop.f32.mrf.mxu1 }
  0xef   : > { %1861 = vmatprep.subr.mxu0 %v995_v45  ;;  %1883 = vmatmul.mubr.msk.f32.gmra.mxu1 %vm764_vm2, %v755_v44 }
  0xf0   : > { %1862 = vmatpush3.msra.mxu0 %v995_v45  ;;  %1865 = vmatprep.mubr.msk.f32.mxu0 %vm764_vm2, %v752_v37  ;;  %v1853_v63 = vpop.f32.mrf.mxu1 }
  0xf1   : > { %1863 = vmatprep.subr.mxu0 %v994_v46  ;;  %1902 = vmatpush3.msra.mxu1 %v1433_v52 }
  0xf2   : > { %1864 = vmatpush3.msra.mxu0 %v994_v46  ;;  %1903 = vmatprep.subr.mxu1 %v1432_v53  ;;  %v1068_v7 = vpop.f32.mrf.mxu1 }
  0xf3   : > { %1866 = vmatmul.mubr.msk.f32.vlgmr.msra.gmra.mxu0 %vm764_vm2, %v753_v38  ;;  %1885 = vmatprep.subr.mxu0 %v1306_v47 }
  0xf4   : > { %1868 = vmatprep.mubr.msk.f32.mxu0 %vm764_vm2, %v754_v43  ;;  %1886 = vmatpush3.msra.mxu0 %v1306_v47  ;;  %v1856_v19 = vpop.f32.mrf.mxu1  ;;  %v1731_v47 = vld [vmem:[%s2416_s0] ss:$0 sm:$0xff] }
  0xf5   : > { %1887 = vmatprep.subr.mxu0 %v1305_v48  ;;  %1904 = vmatpush3.msra.mxu1 %v1432_v53 }
  0xf6   : > { %1888 = vmatpush3.msra.mxu0 %v1305_v48  ;;  %1905 = vmatprep.subr.mxu1 %v1431_v54  ;;  %v1078_v29 = vpop.f32.mrf.mxu1 }
  0xf7   : > { %1869 = vmatmul.mubr.msk.f32.gmra.mxu0 %vm764_vm2, %v755_v44  ;;  %1889 = vmatprep.subr.mxu0 %v1304_v49 }
  0xf8   : > { %1890 = vmatpush3.msra.mxu0 %v1304_v49  ;;  %1893 = vmatprep.mubr.msk.f32.mxu0 %vm764_vm2, %v2200_v12 }
  0xf9   : > { %1891 = vmatprep.subr.mxu0 %v1303_v50  ;;  %1906 = vmatpush3.msra.mxu1 %v1431_v54  ;;  %v1726_v54 = vld [vmem:[%s2417_s9] ss:$0 sm:$0xff] }
  0xfa   : > { %1892 = vmatpush3.msra.mxu0 %v1303_v50 }
  0xfb   : > { %1894 = vmatmul.mubr.msk.f32.vlgmr.msra.gmra.mxu0 %vm764_vm2, %v2214_v16 }
  0xfc   : > { %1896 = vmatprep.mubr.msk.f32.mxu0 %vm764_vm2, %v2221_v18 }
  0xff   : > { %1897 = vmatmul.mubr.msk.f32.gmra.mxu0 %vm764_vm2, %v2231_v20 }
 0x1aa   : > { %v1839_v59 = vpop.f32.mrf.mxu0  ;;  %v1881_v46 = vpop.f32.mrf.mxu1 }
 0x1ab   : > { %v946_v61 = vadd.f32 %v1839_v59, %v1825_v55 }
 0x1ac   : > { %v940_v62 = vpop.f32.mrf.mxu0  ;;  %v1284_v51 = vpop.f32.mrf.mxu1 }
 0x1ad   : > { %v967_v0 = vadd.f32 %v1708_v60, %v946_v61  ;;  %v941_v1 = vadd.f32 %v940_v62, %v843_v56  ;;  %v1290_v62 = vadd.f32 %v1881_v46, %v1726_v54 }
 0x1ae   : > { %v1842_v2 = vpop.f32.mrf.mxu0 }
 0x1af   : > { %v1710_v3 = vmul.f32 -1.442695, %v967_v0  ;;  %v966_v4 = vadd.f32 %v1708_v60, %v941_v1  ;;  %v956_v5 = vadd.f32 %v1842_v2, %v1828_v57 }
 0x1b0   : > { %v950_v6 = vpop.f32.mrf.mxu0 }
 0x1b1   : > { %1953 = vpow2.f32 %v1710_v3  ;;  %v1709_v8 = vmul.f32 -1.442695, %v966_v4  ;;  %v969_v9 = vadd.f32 %v1708_v60, %v956_v5  ;;  %v951_v10 = vadd.f32 %v950_v6, %v853_v58 }
 0x1b2   : > { %v1285_v5 = vadd.f32 %v1726_v54, %v1284_v51 }
 0x1b3   : > { %1955 = vpow2.f32 %v1709_v8  ;;  %v1712_v11 = vmul.f32 -1.442695, %v969_v9  ;;  %v968_v13 = vadd.f32 %v1708_v60, %v951_v10  ;;  %v1867_v14 = vpop.f32.mrf.mxu0  ;;  %v1884_v60 = vpop.f32.mrf.mxu1 }
 0x1b4   : > { %v1159_v17 = vadd.f32 %v1867_v14, %v1853_v63  ;;  %v1300_v9 = vadd.f32 %v1884_v60, %v1726_v54 }
 0x1b5   : > { %1957 = vpow2.f32 %v1712_v11  ;;  %v1711_v21 = vmul.f32 -1.442695, %v968_v13  ;;  %v1153_v22 = vpop.f32.mrf.mxu0  ;;  %v1294_v10 = vpop.f32.mrf.mxu1 }
 0x1b6   : > { %v1180_v23 = vadd.f32 %v1721_v15, %v1159_v17  ;;  %v1154_v24 = vadd.f32 %v1153_v22, %v1068_v7  ;;  %v1295_v17 = vadd.f32 %v1726_v54, %v1294_v10 }
 0x1b7   : > { %1959 = vpow2.f32 %v1711_v21  ;;  %v1870_v25 = vpop.f32.mrf.mxu0 }
 0x1b8   : > { %v1723_v26 = vmul.f32 -1.442695, %v1180_v23  ;;  %v1179_v27 = vadd.f32 %v1721_v15, %v1154_v24  ;;  %v1169_v28 = vadd.f32 %v1870_v25, %v1856_v19 }
 0x1b9   : > { %v1163_v30 = vpop.f32.mrf.mxu0 }
 0x1ba   : > { %v1722_v31 = vmul.f32 -1.442695, %v1179_v27  ;;  %v1182_v32 = vadd.f32 %v1721_v15, %v1169_v28  ;;  %v1164_v33 = vadd.f32 %v1163_v30, %v1078_v29  ;;  %1961 = vpow2.f32 %v1723_v26 }
 0x1bb   : > { %v1895_v44 = vpop.f32.mrf.mxu0 }
 0x1bc   : > { %v1725_v34 = vmul.f32 -1.442695, %v1182_v32  ;;  %v1181_v35 = vadd.f32 %v1721_v15, %v1164_v33  ;;  %1963 = vpow2.f32 %v1722_v31  ;;  %v1386_v53 = vadd.f32 %v1895_v44, %v1731_v47 }
 0x1bd   : > { %v1380_v48 = vpop.f32.mrf.mxu0 }
 0x1be   : > { %v1954_v36 = vpop.eup %1953  ;;  %1965 = vpow2.f32 %v1725_v34  ;;  %v1724_v37 = vmul.f32 -1.442695, %v1181_v35  ;;  %v1381_v0 = vadd.f32 %v1731_v47, %v1380_v48 }
 0x1bf   : > { %v983_v38 = vadd.f32 1.0, %v1954_v36  ;;  %v1898_v56 = vpop.f32.mrf.mxu0 }
 0x1c0   : > { %v1956_v39 = vpop.eup %1955  ;;  %1967 = vpow2.f32 %v1724_v37  ;;  %v1396_v1 = vadd.f32 %v1898_v56, %v1731_v47 }
 0x1c1   : > { %1969 = vrcp.f32 %v983_v38  ;;  %v982_v40 = vadd.f32 1.0, %v1956_v39  ;;  %v1390_v4 = vpop.f32.mrf.mxu0 }
 0x1c2   : > { %v1958_v41 = vpop.eup %1957  ;;  %v1391_v14 = vadd.f32 %v1731_v47, %v1390_v4 }
 0x1c3   : > { %1971 = vrcp.f32 %v982_v40  ;;  %v985_v42 = vadd.f32 1.0, %v1958_v41 }
 0x1c4   : > { %v1960_v43 = vpop.eup %1959 }
 0x1c5   : > { %1973 = vrcp.f32 %v985_v42  ;;  %v984_v45 = vadd.f32 1.0, %v1960_v43 }
 0x1c7   : > { %1975 = vrcp.f32 %v984_v45  ;;  %v1962_v49 = vpop.eup %1961 }
 0x1c8   : > { %v1196_v55 = vadd.f32 1.0, %v1962_v49 }
 0x1c9   : > { %v1964_v50 = vpop.eup %1963 }
 0x1ca   : > { %v1195_v58 = vadd.f32 1.0, %v1964_v50  ;;  %1977 = vrcp.f32 %v1196_v55 }
 0x1cb   : > { %v1966_v52 = vpop.eup %1965 }
 0x1cc   : > { %v1198_v61 = vadd.f32 1.0, %v1966_v52  ;;  %1979 = vrcp.f32 %v1195_v58 }
 0x1cd   : > { %v1968_v57 = vpop.eup %1967 }
 0x1ce   : > { %v1970_v59 = vpop.eup %1969  ;;  %v1197_v3 = vadd.f32 1.0, %v1968_v57  ;;  %1981 = vrcp.f32 %v1198_v61 }
 0x1cf   : > { %v1400_v63 = vmul.f32 %v1970_v59, %v1386_v53 }
 0x1d0   : > { %v1972_v2 = vpop.eup %1971 }
 0x1d1   : > { %v1404_v6 = vadd.f32 %v1400_v63, %v1290_v62  ;;  %v1399_v7 = vmul.f32 %v1972_v2, %v1381_v0 }
 0x1d2   : > { %v1974_v8 = vpop.eup %1973 }
 0x1d3   : > { %1983 = vtanh.f32 %v1404_v6  ;;  %v1403_v11 = vadd.f32 %v1399_v7, %v1285_v5  ;;  %v1402_v13 = vmul.f32 %v1974_v8, %v1396_v1 }
 0x1d4   : > { %v1976_v15 = vpop.eup %1975  ;;  %1985 = vrcp.f32 %v1197_v3 }
 0x1d5   : > { %1987 = vtanh.f32 %v1403_v11  ;;  %v1406_v19 = vadd.f32 %v1402_v13, %v1300_v9  ;;  %v1401_v21 = vmul.f32 %v1976_v15, %v1391_v14 }
 0x1d7   : > { %1989 = vtanh.f32 %v1406_v19  ;;  %v1405_v22 = vadd.f32 %v1401_v21, %v1295_v17  ;;  %v1978_v23 = vpop.eup %1977 }
 0x1d8   : > { %v1412_v27 = vsub.f32 1.0, %v1978_v23  ;;  %v1420_v35 = vmul.f32 %v1978_v23, %v2214_v16 }
 0x1d9   : > { %1991 = vtanh.f32 %v1405_v22  ;;  %v1980_v24 = vpop.eup %1979 }
 0x1da   : > { %v1411_v29 = vsub.f32 1.0, %v1980_v24  ;;  %v1419_v33 = vmul.f32 %v1980_v24, %v2200_v12 }
 0x1db   : > { %v1982_v25 = vpop.eup %1981 }
 0x1dc   : > { %v1414_v36 = vsub.f32 1.0, %v1982_v25  ;;  %v1422_v12 = vmul.f32 %v1982_v25, %v2231_v20 }
 0x1e0   : > { %v1984_v26 = vpop.eup %1983 }
 0x1e1   : > { %v1986_v28 = vpop.eup %1985  ;;  %v1416_v31 = vmul.f32 %v1984_v26, %v1412_v27 }
 0x1e2   : > { %v1988_v30 = vpop.eup %1987  ;;  %v1413_v38 = vsub.f32 1.0, %v1986_v28  ;;  %v1421_v43 = vmul.f32 %v1986_v28, %v2221_v18  ;;  %v1736_v18 = vld [vmem:[%s2418_s24] ss:$0 sm:$0xff] }
 0x1e3   : > { %v1415_v32 = vmul.f32 %v1988_v30, %v1411_v29  ;;  %v1424_v40 = vadd.f32 %v1420_v35, %v1416_v31 }
 0x1e4   : > { %v1990_v34 = vpop.eup %1989 }
 0x1e5   : > { %v1423_v37 = vadd.f32 %v1419_v33, %v1415_v32  ;;  %v1418_v41 = vmul.f32 %v1990_v34, %v1414_v36  ;;  %1428 = vst.msk [vmem:[%s2173_s18 + $0x8] sm:$0xff] %vm764_vm2, %v1424_v40 }
 0x1e6   : > { %v1992_v39 = vpop.eup %1991 }
 0x1e7   : > { %1427 = vst.msk [vmem:[%s2173_s18] sm:$0xff] %vm764_vm2, %v1423_v37  ;;  %1907 = vmatprep.mubr.msk.f32.mxu1 %vm764_vm2, %v1423_v37  ;;  %v1417_v42 = vmul.f32 %v1992_v39, %v1413_v38  ;;  %v1426_v44 = vadd.f32 %v1422_v12, %v1418_v41 }
 0x1e8   : > { %1908 = vmatmul.mubr.msk.f32.vlgmr.msra.gmra.mxu1 %vm764_vm2, %v1424_v40 }
 0x1e9   : > { %v1425_v16 = vadd.f32 %v1421_v43, %v1417_v42  ;;  %1430 = vst.msk [vmem:[%s2173_s18 + $0x18] sm:$0xff] %vm764_vm2, %v1426_v44 }
 0x1eb   : > { %1910 = vmatprep.mubr.msk.f32.mxu1 %vm764_vm2, %v1425_v16  ;;  %1429 = vst.msk [vmem:[%s2173_s18 + $0x10] sm:$0xff] %vm764_vm2, %v1425_v16 }
 0x1ec   : > { %1911 = vmatmul.mubr.msk.f32.gmra.mxu1 %vm764_vm2, %v1426_v44 }
 0x2a8   : > { %v1909_v45 = vpop.f32.mrf.mxu1 }
 0x2a9   : > { %v1526_v46 = vadd.f32 %v1909_v45, %v1736_v18 }
 0x2aa   : > { %v1520_v47 = vpop.f32.mrf.mxu1 }
 0x2ab   : > { %1540 = vst [vmem:[%s2168_s13 + $0x8] sm:$0xff] %v1526_v46  ;;  %v1521_v20 = vadd.f32 %v1736_v18, %v1520_v47 }
 0x2ac   : > { %v1912_v48 = vpop.f32.mrf.mxu1 }
 0x2ad   : > { %1539 = vst [vmem:[%s2168_s13] sm:$0xff] %v1521_v20  ;;  %v1536_v49 = vadd.f32 %v1912_v48, %v1736_v18 }
 0x2ae   : > { %v1530_v50 = vpop.f32.mrf.mxu1 }
 0x2af   : > { %1542 = vst [vmem:[%s2168_s13 + $0x18] sm:$0xff] %v1536_v49  ;;  %v1531_v51 = vadd.f32 %v1736_v18, %v1530_v50 }
 0x2b1   : > { %1541 = vst [vmem:[%s2168_s13 + $0x10] sm:$0xff] %v1531_v51 }
 0x2b2 PF: > { %s2419_s18 = sld [smem:[#allocation4_spill]] }
 0x2b3   : > { %s2420_s24 = sld [smem:[#allocation2_spill]] }
 0x2b4   : > { %s2421_s25 = sld [smem:[#allocation3_spill]] }
 0x2b5   : > { %s2422_s26 = sld [smem:[#allocation5_spill]] }
 0x2b6   : > { %s2423_s27 = sld [smem:[#allocation6_spill]] }
 0x2b8   : > { %s28_s28 = sadd.s32 1, %s2419_s18  }
 0x2b9   : > { %p25_p8 = scmp.ge.s32.totalorder %s28_s28, 18  }
 0x2bb   :  { %27 = sbr.rel (!%p25_p8) target bundleno = 8 (0x8), region = 133 }

</bundles_post_ra>
